<compile_context>
chip_gen: v6e
topology: v6e:2x2x1
jax: 0.10.0
libtpu: 0.0.40
codegen_flags: <defaults>
</compile_context>

<pallas_src>
import math

import jax
import jax.numpy as jnp
from jax.experimental import pallas as pl
from jax.experimental.pallas import tpu as pltpu


TILE_V = 128  # vocab tile (lane-aligned); raise (and size for VMEM) for real vocab sizes


def attention_decoder_kernel(
    emb_ref,       # (B, E)       f32   embedded target tokens
    h_ref,         # (B, H)       f32   last-layer hidden state
    c_ref,         # (B, H)       f32   last-layer cell state
    enc_ref,       # (B, S, 2H)   f32   encoder outputs (batch-major, resident)
    attn_wh_ref,   # (H, H)       f32   attention weight, rows that multiply h
    attn_we_ref,   # (2H, H)      f32   attention weight, rows that multiply enc
    attn_b_ref,    # (1, H)       f32
    v_ref,         # (1, H)       f32   attention scoring vector
    w_ih_e_ref,    # (E, 4H)      f32   LSTM input->gates (embedding rows)
    w_ih_c_ref,    # (2H, 4H)     f32   LSTM input->gates (context rows)
    w_hh_ref,      # (H, 4H)      f32   LSTM hidden->gates
    b_lstm_ref,    # (1, 4H)      f32   b_ih + b_hh
    out_w_ref,     # (3H, TILE_V) bf16  output proj ([h | ctx] rows), tiled over grid
    out_b_ref,     # (1, TILE_V)  f32   output bias, tiled over grid
    logp_ref,      # (B, V)   out       log-softmax over vocab (resident block)
    h_out_ref,     # (B, H)   out       new hidden (aliased with h_ref)
    c_out_ref,     # (B, H)   out       new cell   (aliased with c_ref)
    attn_out_ref,  # (B, S)   out       attention weights
    hc_ref,        # (B, 3H)  scratch   [h_new | ctx] activation (f32)
    m_ref,         # (B, 1)   scratch   running max (logsumexp)
    s_ref,         # (B, 1)   scratch   running sum(exp) (logsumexp)
):
    j = pl.program_id(0)
    n_tiles = pl.num_programs(0)
    tile_v = out_w_ref.shape[1]

    # ------------ attention + context + LSTM cell: once, on the first vocab tile ------------
    @pl.when(j == 0)
    def _attention_and_lstm():
        h = h_ref[...]
        c = c_ref[...]
        enc = enc_ref[...]
        B, S, twoH = enc.shape
        H = h.shape[1]

        # energy = tanh(h @ Wa_h + enc @ Wa_e + b)   (concat-free, h term computed once)
        term_h = jnp.dot(h, attn_wh_ref[...], preferred_element_type=jnp.float32)       # (B, H)
        enc_flat = enc.reshape(B * S, twoH)
        term_e = jnp.dot(enc_flat, attn_we_ref[...],
                         preferred_element_type=jnp.float32).reshape(B, S, H)
        energy = jnp.tanh(term_e + term_h[:, None, :] + attn_b_ref[...])                # (B, S, H)

        # score via batched MXU contraction (v . energy)
        v_b = jnp.broadcast_to(v_ref[...][None, :, :], (B, 1, H))
        score = jnp.einsum("bqh,bsh->bqs", v_b, energy,
                           preferred_element_type=jnp.float32)[:, 0, :]                 # (B, S)

        # softmax over sequence (EUP approx reciprocal)
        score = score - jnp.max(score, axis=1, keepdims=True)
        es = jnp.exp(score)
        attn = es * pl.reciprocal(jnp.sum(es, axis=1, keepdims=True), approx=True)
        attn_out_ref[...] = attn

        # context = attn bmm enc  (batched MXU contraction)
        ctx = jnp.einsum("bqs,bsk->bqk", attn[:, None, :], enc,
                         preferred_element_type=jnp.float32)[:, 0, :]                   # (B, 2H)

        # single-step LSTM cell with split input weights (no concat)
        gates = (
            jnp.dot(emb_ref[...], w_ih_e_ref[...], preferred_element_type=jnp.float32)
            + jnp.dot(ctx, w_ih_c_ref[...], preferred_element_type=jnp.float32)
            + jnp.dot(h, w_hh_ref[...], preferred_element_type=jnp.float32)
            + b_lstm_ref[...]
        )                                                                                # (B, 4H)
        i_g = jax.nn.sigmoid(gates[:, 0 * H:1 * H])
        f_g = jax.nn.sigmoid(gates[:, 1 * H:2 * H])
        g_g = jnp.tanh(gates[:, 2 * H:3 * H])
        o_g = jax.nn.sigmoid(gates[:, 3 * H:4 * H])
        c_new = f_g * c + i_g * g_g
        h_new = o_g * jnp.tanh(c_new)
        h_out_ref[...] = h_new
        c_out_ref[...] = c_new

        # build the combined [h_new | ctx] activation once (static-slice stores, no concat op)
        hc_ref[:, :H] = h_new
        hc_ref[:, H:] = ctx

        # init online logsumexp accumulators
        m_ref[...] = jnp.full(m_ref.shape, -jnp.inf, dtype=jnp.float32)
        s_ref[...] = jnp.zeros(s_ref.shape, dtype=jnp.float32)

    # ------------ per vocab tile: single bf16 matmul + online logsumexp ------------
    logits = (
        jnp.dot(hc_ref[...].astype(out_w_ref.dtype), out_w_ref[...],
                preferred_element_type=jnp.float32)
        + out_b_ref[...]
    )                                                                                    # (B, TILE_V)
    col = pl.multiple_of(j * tile_v, tile_v)
    logp_ref[:, pl.ds(col, tile_v)] = logits        # store raw logits for now

    m_old = m_ref[...]
    m_new = jnp.maximum(m_old, jnp.max(logits, axis=1, keepdims=True))
    s_ref[...] = s_ref[...] * jnp.exp(m_old - m_new) + \
        jnp.sum(jnp.exp(logits - m_new), axis=1, keepdims=True)
    m_ref[...] = m_new

    # ------------ finalize log-softmax on the last tile ------------
    @pl.when(j == n_tiles - 1)
    def _finalize_log_softmax():
        lse = m_ref[...] + jnp.log(s_ref[...])      # (B, 1)
        logp_ref[...] = logp_ref[...] - lse


# -----------------------------------------------------------------------------
# Wrapper (embedding gather, layout glue, pallas_call plumbing)
# -----------------------------------------------------------------------------
@jax.jit
def attention_decoder(input_ids, last_hidden, encoder_outputs, params):
    """Mirrors AttentionDecoder.forward (n_layers=1, dropout=0).

    input_ids:        (B,) int32
    last_hidden:      (h, c), each (n_layers, B, H)
    encoder_outputs:  (S, B, 2H)  (PyTorch seq-major convention)
    returns: (log_probs (B, V), (hidden (1,B,H), cell (1,B,H)), attn (B,1,S))
    """
    embedded = jnp.take(params["embed"], input_ids, axis=0)            # (B, E)
    h_last = last_hidden[0][-1]                                        # (B, H)
    c_last = last_hidden[1][-1]                                        # (B, H)
    enc_bmajor = jnp.transpose(encoder_outputs, (1, 0, 2))             # (B, S, 2H)

    B, S, twoH = enc_bmajor.shape
    H = h_last.shape[-1]
    E = embedded.shape[-1]
    V = params["out_w"].shape[1]
    tile_v = min(TILE_V, V)
    assert V % tile_v == 0
    n_tiles = V // tile_v

    def res2(shape):
        return pl.BlockSpec(shape, lambda j: (0, 0))

    def res3(shape):
        return pl.BlockSpec(shape, lambda j: (0, 0, 0))

    in_specs = [
        res2((B, E)),                                        # embedded
        res2((B, H)),                                        # h
        res2((B, H)),                                        # c
        res3((B, S, twoH)),                                  # encoder outputs
        res2((H, H)),                                        # attn_wh
        res2((twoH, H)),                                     # attn_we
        res2((1, H)),                                        # attn_b
        res2((1, H)),                                        # v
        res2((E, 4 * H)),                                    # w_ih_e
        res2((twoH, 4 * H)),                                 # w_ih_c
        res2((H, 4 * H)),                                    # w_hh
        res2((1, 4 * H)),                                    # b_lstm
        pl.BlockSpec((3 * H, tile_v), lambda j: (0, j)),     # out_w (bf16, pipelined)
        pl.BlockSpec((1, tile_v), lambda j: (0, j)),         # out_b (pipelined)
    ]
    out_specs = (
        res2((B, V)),        # logp: resident across all vocab tiles
        res2((B, H)),        # h_out
        res2((B, H)),        # c_out
        res2((B, S)),        # attn
    )
    out_shapes = (
        jax.ShapeDtypeStruct((B, V), jnp.float32),
        jax.ShapeDtypeStruct((B, H), jnp.float32),
        jax.ShapeDtypeStruct((B, H), jnp.float32),
        jax.ShapeDtypeStruct((B, S), jnp.float32),
    )
    scratch_shapes = [
        pltpu.VMEM((B, 3 * H), jnp.float32),  # [h_new | ctx] activation
        pltpu.VMEM((B, 1), jnp.float32),      # running max
        pltpu.VMEM((B, 1), jnp.float32),      # running sum(exp)
    ]

    flops = int(
        2 * B * 3 * H * V                   # vocab projection
        + 2 * B * S * twoH * H              # attention energy (enc term)
        + 2 * B * H * H                     # attention energy (h term)
        + 2 * B * S * H + 2 * B * S * twoH  # score + context
        + 2 * B * (E + 3 * H) * 4 * H       # LSTM gates
    )
    transcendentals = int(B * S * H + B * S + 5 * B * H + 2 * B * V)
    bytes_accessed = int(
        4 * (B * S * twoH + B * E + 2 * B * H)            # activations in
        + 4 * (3 * H * H + (E + 3 * H) * 4 * H + 6 * H)   # small f32 weights
        + 2 * 3 * H * V + 4 * V                           # bf16 out_w + bias
        + 4 * (B * V + 2 * B * H + B * S)                 # outputs
    )

    logp, h_new, c_new, attn = pl.pallas_call(
        attention_decoder_kernel,
        grid=(n_tiles,),
        in_specs=in_specs,
        out_specs=out_specs,
        out_shape=out_shapes,
        scratch_shapes=scratch_shapes,
        input_output_aliases={1: 1, 2: 2},   # h -> h_out, c -> c_out
        compiler_params=pltpu.CompilerParams(dimension_semantics=("arbitrary",)),
        cost_estimate=pl.CostEstimate(
            flops=flops, transcendentals=transcendentals, bytes_accessed=bytes_accessed),
    )(
        embedded, h_last, c_last, enc_bmajor,
        params["attn_wh"], params["attn_we"], params["attn_b"], params["v"],
        params["w_ih_e"], params["w_ih_c"], params["w_hh"], params["b_lstm"],
        params["out_w"], params["out_b"],
    )

    hidden = h_new[None]             # (1, B, H)  (n_layers = 1)
    cell = c_new[None]               # (1, B, H)
    attn_weights = attn[:, None, :]  # (B, 1, S)
    return logp, (hidden, cell), attn_weights


# -----------------------------------------------------------------------------
# Deterministic parameter initialization (shapes from the module's __init__),
# pre-split and pre-transposed for the kernel; out_w stored in bf16.
# -----------------------------------------------------------------------------
def init_params(key, embed_dim, hidden_dim, vocab_size, pad_token=1):
    E, H, V = embed_dim, hidden_dim, vocab_size
    ks = jax.random.split(key, 8)
    embed = 0.001 * jax.random.normal(ks[0], (V, E), jnp.float32)
    embed = embed.at[pad_token].set(0.0)                            # padding_idx
    attn_w = 0.01 * jax.random.normal(ks[1], (3 * H, H), jnp.float32)   # Linear(3H->H).weight.T
    attn_b = jnp.zeros((1, H), jnp.float32)
    stdv = 1.0 / math.sqrt(H)
    v = jax.random.uniform(ks[2], (1, H), jnp.float32, -stdv, stdv)
    w_ih = 0.05 * jax.random.normal(ks[3], (E + 2 * H, 4 * H), jnp.float32)
    w_hh = 0.05 * jax.random.normal(ks[4], (H, 4 * H), jnp.float32)
    b_lstm = jnp.zeros((1, 4 * H), jnp.float32)                     # b_ih + b_hh (init 0)
    out_w = 0.01 * jax.random.normal(ks[5], (3 * H, V), jnp.float32)
    out_b = jnp.zeros((1, V), jnp.float32)
    return dict(
        embed=embed,
        attn_wh=attn_w[:H], attn_we=attn_w[H:], attn_b=attn_b, v=v,
        w_ih_e=w_ih[:E], w_ih_c=w_ih[E:], w_hh=w_hh, b_lstm=b_lstm,
        out_w=out_w.astype(jnp.bfloat16),
        out_b=out_b,
    )


# -----------------------------------------------------------------------------
# Pure-JAX reference (same math, bf16 output projection mirrored) for correctness.
# -----------------------------------------------------------------------------
def reference(input_ids, last_hidden, encoder_outputs, params):
    emb = jnp.take(params["embed"], input_ids, axis=0)
    h = last_hidden[0][-1]
    c = last_hidden[1][-1]
    enc = jnp.transpose(encoder_outputs, (1, 0, 2))
    H = h.shape[1]
    energy = jnp.tanh(enc @ params["attn_we"]
                      + (h @ params["attn_wh"])[:, None, :]
                      + params["attn_b"])
    score = jnp.einsum("bsh,h->bs", energy, params["v"][0])
    attn = jax.nn.softmax(score, axis=1)
    context = jnp.einsum("bs,bsd->bd", attn, enc)
    gates = (emb @ params["w_ih_e"] + context @ params["w_ih_c"]
             + h @ params["w_hh"] + params["b_lstm"])
    i_g = jax.nn.sigmoid(gates[:, :H])
    f_g = jax.nn.sigmoid(gates[:, H:2 * H])
    g_g = jnp.tanh(gates[:, 2 * H:3 * H])
    o_g = jax.nn.sigmoid(gates[:, 3 * H:])
    c_new = f_g * c + i_g * g_g
    h_new = o_g * jnp.tanh(c_new)
    hc = jnp.concatenate([h_new, context], axis=1).astype(jnp.bfloat16)
    logits = jnp.dot(hc, params["out_w"],
                     preferred_element_type=jnp.float32) + params["out_b"]
    logp = jax.nn.log_softmax(logits, axis=1)
    return logp, h_new, c_new, attn


if __name__ == "__main__":
    # Small shapes: batch=4, seq=8, embed=16, hidden=32, vocab=256 (2 vocab tiles).
    B, S, E, H, V = 4, 8, 16, 32, 256
    key = jax.random.PRNGKey(0)
    k_par, k_in, k_h, k_c, k_enc = jax.random.split(key, 5)

    params = init_params(k_par, embed_dim=E, hidden_dim=H, vocab_size=V, pad_token=1)

    input_ids = jax.random.randint(k_in, (B,), 0, V, dtype=jnp.int32)
    h0 = jax.random.normal(k_h, (1, B, H), jnp.float32)     # (n_layers, B, H)
    c0 = jax.random.normal(k_c, (1, B, H), jnp.float32)
    encoder_outputs = jax.random.normal(k_enc, (S, B, 2 * H), jnp.float32)

    logp, (hidden, cell), attn_w = attention_decoder(
        input_ids, (h0, c0), encoder_outputs, params)
    jax.block_until_ready((logp, hidden, cell, attn_w))

    # sanity check against the pure-JAX reference
    r_logp, r_h, r_c, r_attn = reference(input_ids, (h0, c0), encoder_outputs, params)
    assert logp.shape == (B, V)
    assert hidden.shape == (1, B, H) and cell.shape == (1, B, H)
    assert attn_w.shape == (B, 1, S)
    # Tolerances loosened vs. f32-exact: bf16 vocab projection + approx EUP reciprocal.
    assert jnp.allclose(logp, r_logp, atol=1e-2), float(jnp.max(jnp.abs(logp - r_logp)))
    assert jnp.allclose(hidden[0], r_h, atol=5e-3)
    assert jnp.allclose(cell[0], r_c, atol=5e-3)
    assert jnp.allclose(attn_w[:, 0, :], r_attn, atol=2e-3)

    print("KERNEL_OK")
</pallas_src>

<mosaic_0001>
module attributes {stable_mosaic.version = 11 : i64} {
  func.func @attention_decoder_kernel(%arg0: i32, %arg1: memref<4x16xf32, #tpu.memory_space<vmem>>, %arg2: memref<4x32xf32, #tpu.memory_space<vmem>>, %arg3: memref<4x32xf32, #tpu.memory_space<vmem>>, %arg4: memref<4x8x64xf32, #tpu.memory_space<vmem>>, %arg5: memref<32x32xf32, #tpu.memory_space<vmem>>, %arg6: memref<64x32xf32, #tpu.memory_space<vmem>>, %arg7: memref<1x32xf32, #tpu.memory_space<vmem>>, %arg8: memref<1x32xf32, #tpu.memory_space<vmem>>, %arg9: memref<16x128xf32, #tpu.memory_space<vmem>>, %arg10: memref<64x128xf32, #tpu.memory_space<vmem>>, %arg11: memref<32x128xf32, #tpu.memory_space<vmem>>, %arg12: memref<1x128xf32, #tpu.memory_space<vmem>>, %arg13: memref<96x128xbf16, #tpu.memory_space<vmem>>, %arg14: memref<1x128xf32, #tpu.memory_space<vmem>>, %arg15: memref<4x256xf32, #tpu.memory_space<vmem>>, %arg16: memref<4x32xf32, #tpu.memory_space<vmem>>, %arg17: memref<4x32xf32, #tpu.memory_space<vmem>>, %arg18: memref<4x8xf32, #tpu.memory_space<vmem>>, %arg19: memref<4x96xf32, #tpu.memory_space<vmem>>, %arg20: memref<4x1xf32, #tpu.memory_space<vmem>>, %arg21: memref<4x1xf32, #tpu.memory_space<vmem>>) attributes {dimension_semantics = [#tpu.dimension_semantics<arbitrary>], iteration_bounds = array<i64: 2>, scalar_prefetch = 0 : i64, scratch_operands = 3 : i64, tpu.core_type = #tpu.core_type<tc>, window_params = [{pipeline_mode = #tpu.pipeline_mode<synchronous>, transform_indices = @transform_0, window_bounds = array<i64: 4, 16>}, {pipeline_mode = #tpu.pipeline_mode<synchronous>, transform_indices = @transform_1, window_bounds = array<i64: 4, 32>}, {pipeline_mode = #tpu.pipeline_mode<synchronous>, transform_indices = @transform_2, window_bounds = array<i64: 4, 32>}, {pipeline_mode = #tpu.pipeline_mode<synchronous>, transform_indices = @transform_3, window_bounds = array<i64: 4, 8, 64>}, {pipeline_mode = #tpu.pipeline_mode<synchronous>, transform_indices = @transform_4, window_bounds = array<i64: 32, 32>}, {pipeline_mode = #tpu.pipeline_mode<synchronous>, transform_indices = @transform_5, window_bounds = array<i64: 64, 32>}, {pipeline_mode = #tpu.pipeline_mode<synchronous>, transform_indices = @transform_6, window_bounds = array<i64: 1, 32>}, {pipeline_mode = #tpu.pipeline_mode<synchronous>, transform_indices = @transform_7, window_bounds = array<i64: 1, 32>}, {pipeline_mode = #tpu.pipeline_mode<synchronous>, transform_indices = @transform_8, window_bounds = array<i64: 16, 128>}, {pipeline_mode = #tpu.pipeline_mode<synchronous>, transform_indices = @transform_9, window_bounds = array<i64: 64, 128>}, {pipeline_mode = #tpu.pipeline_mode<synchronous>, transform_indices = @transform_10, window_bounds = array<i64: 32, 128>}, {pipeline_mode = #tpu.pipeline_mode<synchronous>, transform_indices = @transform_11, window_bounds = array<i64: 1, 128>}, {transform_indices = @transform_12, window_bounds = array<i64: 96, 128>}, {transform_indices = @transform_13, window_bounds = array<i64: 1, 128>}, {pipeline_mode = #tpu.pipeline_mode<synchronous>, transform_indices = @transform_14, window_bounds = array<i64: 4, 256>}, {pipeline_mode = #tpu.pipeline_mode<synchronous>, transform_indices = @transform_15, window_bounds = array<i64: 4, 32>}, {pipeline_mode = #tpu.pipeline_mode<synchronous>, transform_indices = @transform_16, window_bounds = array<i64: 4, 32>}, {pipeline_mode = #tpu.pipeline_mode<synchronous>, transform_indices = @transform_17, window_bounds = array<i64: 4, 8>}]} {
    %c0_i32 = arith.constant 0 : i32
    %0 = arith.cmpi eq, %arg0, %c0_i32 : i32
    %1 = arith.extui %0 : i1 to i32
    %c0_i32_0 = arith.constant 0 : i32
    %2 = arith.cmpi ne, %1, %c0_i32_0 : i32
    scf.if %2 {
      %c0_18 = arith.constant 0 : index
      %c0_19 = arith.constant 0 : index
      %33 = vector.load %arg2[%c0_18, %c0_19] : memref<4x32xf32, #tpu.memory_space<vmem>>, vector<4x32xf32>
      %c0_20 = arith.constant 0 : index
      %c0_21 = arith.constant 0 : index
      %34 = vector.load %arg3[%c0_20, %c0_21] : memref<4x32xf32, #tpu.memory_space<vmem>>, vector<4x32xf32>
      %c0_22 = arith.constant 0 : index
      %c0_23 = arith.constant 0 : index
      %c0_24 = arith.constant 0 : index
      %35 = vector.load %arg4[%c0_22, %c0_23, %c0_24] : memref<4x8x64xf32, #tpu.memory_space<vmem>>, vector<4x8x64xf32>
      %c0_25 = arith.constant 0 : index
      %c0_26 = arith.constant 0 : index
      %36 = vector.load %arg5[%c0_25, %c0_26] : memref<32x32xf32, #tpu.memory_space<vmem>>, vector<32x32xf32>
      %cst_27 = arith.constant dense<0.000000e+00> : vector<4x32xf32>
      %37 = tpu.matmul %33, %36, %cst_27 {dimension_numbers = #tpu.dot_dimension_numbers<[1], [0], [0], [1], [0, 0, 1, 1], [], []>} : vector<4x32xf32>, vector<32x32xf32>, vector<4x32xf32> -> vector<4x32xf32>
      %38 = vector.shape_cast %35 : vector<4x8x64xf32> to vector<32x64xf32>
      %c0_28 = arith.constant 0 : index
      %c0_29 = arith.constant 0 : index
      %39 = vector.load %arg6[%c0_28, %c0_29] : memref<64x32xf32, #tpu.memory_space<vmem>>, vector<64x32xf32>
      %cst_30 = arith.constant dense<0.000000e+00> : vector<32x32xf32>
      %40 = tpu.matmul %38, %39, %cst_30 {dimension_numbers = #tpu.dot_dimension_numbers<[1], [0], [0], [1], [0, 0, 1, 1], [], []>} : vector<32x64xf32>, vector<64x32xf32>, vector<32x32xf32> -> vector<32x32xf32>
      %41 = vector.shape_cast %40 : vector<32x32xf32> to vector<4x8x32xf32>
      %42 = vector.shape_cast %37 : vector<4x32xf32> to vector<4x1x32xf32>
      %43 = vector.broadcast %42 : vector<4x1x32xf32> to vector<4x8x32xf32>
      %44 = arith.addf %41, %43 : vector<4x8x32xf32>
      %c0_31 = arith.constant 0 : index
      %c0_32 = arith.constant 0 : index
      %45 = vector.load %arg7[%c0_31, %c0_32] : memref<1x32xf32, #tpu.memory_space<vmem>>, vector<1x32xf32>
      %46 = vector.shape_cast %45 : vector<1x32xf32> to vector<1x1x32xf32>
      %47 = vector.broadcast %46 : vector<1x1x32xf32> to vector<4x8x32xf32>
      %48 = arith.addf %44, %47 : vector<4x8x32xf32>
      %49 = math.tanh %48 : vector<4x8x32xf32>
      %c0_33 = arith.constant 0 : index
      %c0_34 = arith.constant 0 : index
      %50 = vector.load %arg8[%c0_33, %c0_34] : memref<1x32xf32, #tpu.memory_space<vmem>>, vector<1x32xf32>
      %51 = vector.shape_cast %50 : vector<1x32xf32> to vector<1x1x32xf32>
      %52 = vector.shape_cast %51 : vector<1x1x32xf32> to vector<1x1x32xf32>
      %53 = vector.broadcast %52 : vector<1x1x32xf32> to vector<4x1x32xf32>
      "tpu.trace_start"() <{level = 10 : i32, message = "bqh,bsh->bqs"}> : () -> ()
      %cst_35 = arith.constant dense<0.000000e+00> : vector<4x1x8xf32>
      %54 = tpu.matmul %53, %49, %cst_35 {dimension_numbers = #tpu.dot_dimension_numbers<[2], [2], [1], [1], [0, 0, 0, 1, 1, 1], [0], [0]>} : vector<4x1x32xf32>, vector<4x8x32xf32>, vector<4x1x8xf32> -> vector<4x1x8xf32>
      "tpu.trace_stop"() : () -> ()
      %55 = vector.shape_cast %54 : vector<4x1x8xf32> to vector<4x8xf32>
      %cst_36 = arith.constant dense<0xFF800000> : vector<4xf32>
      %56 = vector.multi_reduction <maximumf>, %55, %cst_36 [1] : vector<4x8xf32> to vector<4xf32>
      %57 = vector.shape_cast %56 : vector<4xf32> to vector<4x1xf32>
      %58 = vector.broadcast %57 : vector<4x1xf32> to vector<4x8xf32>
      %59 = arith.subf %55, %58 : vector<4x8xf32>
      %60 = math.exp %59 : vector<4x8xf32>
      %cst_37 = arith.constant dense<0.000000e+00> : vector<4xf32>
      %61 = vector.multi_reduction <add>, %60, %cst_37 [1] : vector<4x8xf32> to vector<4xf32>
      %62 = vector.shape_cast %61 : vector<4xf32> to vector<4x1xf32>
      %63 = tpu.reciprocal %62 {approx = true} : vector<4x1xf32> -> vector<4x1xf32>
      %64 = vector.broadcast %63 : vector<4x1xf32> to vector<4x8xf32>
      %65 = arith.mulf %60, %64 : vector<4x8xf32>
      %c0_38 = arith.constant 0 : index
      %c0_39 = arith.constant 0 : index
      %66 = vector.load %arg18[%c0_38, %c0_39] : memref<4x8xf32, #tpu.memory_space<vmem>>, vector<4x8xf32>
      tpu.vector_store %arg18[%c0_38, %c0_39], %65 {strides = array<i32>} : memref<4x8xf32, #tpu.memory_space<vmem>>, vector<4x8xf32>,
      %67 = vector.shape_cast %65 : vector<4x8xf32> to vector<4x1x8xf32>
      "tpu.trace_start"() <{level = 10 : i32, message = "bqs,bsk->bqk"}> : () -> ()
      %cst_40 = arith.constant dense<0.000000e+00> : vector<4x1x64xf32>
      %68 = tpu.matmul %67, %35, %cst_40 {dimension_numbers = #tpu.dot_dimension_numbers<[2], [1], [1], [2], [0, 0, 0, 1, 1, 2], [0], [0]>} : vector<4x1x8xf32>, vector<4x8x64xf32>, vector<4x1x64xf32> -> vector<4x1x64xf32>
      "tpu.trace_stop"() : () -> ()
      %69 = vector.shape_cast %68 : vector<4x1x64xf32> to vector<4x64xf32>
      %c0_41 = arith.constant 0 : index
      %c0_42 = arith.constant 0 : index
      %70 = vector.load %arg1[%c0_41, %c0_42] : memref<4x16xf32, #tpu.memory_space<vmem>>, vector<4x16xf32>
      %c0_43 = arith.constant 0 : index
      %c0_44 = arith.constant 0 : index
      %71 = vector.load %arg9[%c0_43, %c0_44] : memref<16x128xf32, #tpu.memory_space<vmem>>, vector<16x128xf32>
      %cst_45 = arith.constant dense<0.000000e+00> : vector<4x128xf32>
      %72 = tpu.matmul %70, %71, %cst_45 {dimension_numbers = #tpu.dot_dimension_numbers<[1], [0], [0], [1], [0, 0, 1, 1], [], []>} : vector<4x16xf32>, vector<16x128xf32>, vector<4x128xf32> -> vector<4x128xf32>
      %c0_46 = arith.constant 0 : index
      %c0_47 = arith.constant 0 : index
      %73 = vector.load %arg10[%c0_46, %c0_47] : memref<64x128xf32, #tpu.memory_space<vmem>>, vector<64x128xf32>
      %cst_48 = arith.constant dense<0.000000e+00> : vector<4x128xf32>
      %74 = tpu.matmul %69, %73, %cst_48 {dimension_numbers = #tpu.dot_dimension_numbers<[1], [0], [0], [1], [0, 0, 1, 1], [], []>} : vector<4x64xf32>, vector<64x128xf32>, vector<4x128xf32> -> vector<4x128xf32>
      %75 = arith.addf %72, %74 : vector<4x128xf32>
      %c0_49 = arith.constant 0 : index
      %c0_50 = arith.constant 0 : index
      %76 = vector.load %arg11[%c0_49, %c0_50] : memref<32x128xf32, #tpu.memory_space<vmem>>, vector<32x128xf32>
      %cst_51 = arith.constant dense<0.000000e+00> : vector<4x128xf32>
      %77 = tpu.matmul %33, %76, %cst_51 {dimension_numbers = #tpu.dot_dimension_numbers<[1], [0], [0], [1], [0, 0, 1, 1], [], []>} : vector<4x32xf32>, vector<32x128xf32>, vector<4x128xf32> -> vector<4x128xf32>
      %78 = arith.addf %75, %77 : vector<4x128xf32>
      %c0_52 = arith.constant 0 : index
      %c0_53 = arith.constant 0 : index
      %79 = vector.load %arg12[%c0_52, %c0_53] : memref<1x128xf32, #tpu.memory_space<vmem>>, vector<1x128xf32>
      %80 = vector.broadcast %79 : vector<1x128xf32> to vector<4x128xf32>
      %81 = arith.addf %78, %80 : vector<4x128xf32>
      %82 = vector.extract_strided_slice %81 {offsets = [0, 0], sizes = [4, 32], strides = [1, 1]} : vector<4x128xf32> to vector<4x32xf32>
      %83 = arith.negf %82 : vector<4x32xf32>
      %84 = math.exp %83 : vector<4x32xf32>
      %cst_54 = arith.constant 1.000000e+00 : f32
      %85 = vector.broadcast %cst_54 : f32 to vector<4x32xf32>
      %86 = arith.addf %85, %84 : vector<4x32xf32>
      %87 = arith.divf %85, %86 : vector<4x32xf32>
      %88 = vector.extract_strided_slice %81 {offsets = [0, 32], sizes = [4, 32], strides = [1, 1]} : vector<4x128xf32> to vector<4x32xf32>
      %89 = arith.negf %88 : vector<4x32xf32>
      %90 = math.exp %89 : vector<4x32xf32>
      %cst_55 = arith.constant 1.000000e+00 : f32
      %91 = vector.broadcast %cst_55 : f32 to vector<4x32xf32>
      %92 = arith.addf %91, %90 : vector<4x32xf32>
      %93 = arith.divf %91, %92 : vector<4x32xf32>
      %94 = vector.extract_strided_slice %81 {offsets = [0, 64], sizes = [4, 32], strides = [1, 1]} : vector<4x128xf32> to vector<4x32xf32>
      %95 = math.tanh %94 : vector<4x32xf32>
      %96 = vector.extract_strided_slice %81 {offsets = [0, 96], sizes = [4, 32], strides = [1, 1]} : vector<4x128xf32> to vector<4x32xf32>
      %97 = arith.negf %96 : vector<4x32xf32>
      %98 = math.exp %97 : vector<4x32xf32>
      %cst_56 = arith.constant 1.000000e+00 : f32
      %99 = vector.broadcast %cst_56 : f32 to vector<4x32xf32>
      %100 = arith.addf %99, %98 : vector<4x32xf32>
      %101 = arith.divf %99, %100 : vector<4x32xf32>
      %102 = arith.mulf %93, %34 : vector<4x32xf32>
      %103 = arith.mulf %87, %95 : vector<4x32xf32>
      %104 = arith.addf %102, %103 : vector<4x32xf32>
      %105 = math.tanh %104 : vector<4x32xf32>
      %106 = arith.mulf %101, %105 : vector<4x32xf32>
      %c0_57 = arith.constant 0 : index
      %c0_58 = arith.constant 0 : index
      %107 = vector.load %arg16[%c0_57, %c0_58] : memref<4x32xf32, #tpu.memory_space<vmem>>, vector<4x32xf32>
      tpu.vector_store %arg16[%c0_57, %c0_58], %106 {strides = array<i32>} : memref<4x32xf32, #tpu.memory_space<vmem>>, vector<4x32xf32>,
      %c0_59 = arith.constant 0 : index
      %c0_60 = arith.constant 0 : index
      %108 = vector.load %arg17[%c0_59, %c0_60] : memref<4x32xf32, #tpu.memory_space<vmem>>, vector<4x32xf32>
      tpu.vector_store %arg17[%c0_59, %c0_60], %104 {strides = array<i32>} : memref<4x32xf32, #tpu.memory_space<vmem>>, vector<4x32xf32>,
      %c0_61 = arith.constant 0 : index
      %c0_62 = arith.constant 0 : index
      %109 = vector.load %arg19[%c0_61, %c0_62] : memref<4x96xf32, #tpu.memory_space<vmem>>, vector<4x32xf32>
      tpu.vector_store %arg19[%c0_61, %c0_62], %106 {strides = array<i32>} : memref<4x96xf32, #tpu.memory_space<vmem>>, vector<4x32xf32>,
      %c0_63 = arith.constant 0 : index
      %c32 = arith.constant 32 : index
      %110 = vector.load %arg19[%c0_63, %c32] : memref<4x96xf32, #tpu.memory_space<vmem>>, vector<4x64xf32>
      tpu.vector_store %arg19[%c0_63, %c32], %69 {strides = array<i32>} : memref<4x96xf32, #tpu.memory_space<vmem>>, vector<4x64xf32>,
      %cst_64 = arith.constant 0xFF800000 : f32
      %111 = vector.broadcast %cst_64 : f32 to vector<4x1xf32>
      %c0_65 = arith.constant 0 : index
      %c0_66 = arith.constant 0 : index
      %112 = vector.load %arg20[%c0_65, %c0_66] : memref<4x1xf32, #tpu.memory_space<vmem>>, vector<4x1xf32>
      tpu.vector_store %arg20[%c0_65, %c0_66], %111 {strides = array<i32>} : memref<4x1xf32, #tpu.memory_space<vmem>>, vector<4x1xf32>,
      %cst_67 = arith.constant 0.000000e+00 : f32
      %113 = vector.broadcast %cst_67 : f32 to vector<4x1xf32>
      %c0_68 = arith.constant 0 : index
      %c0_69 = arith.constant 0 : index
      %114 = vector.load %arg21[%c0_68, %c0_69] : memref<4x1xf32, #tpu.memory_space<vmem>>, vector<4x1xf32>
      tpu.vector_store %arg21[%c0_68, %c0_69], %113 {strides = array<i32>} : memref<4x1xf32, #tpu.memory_space<vmem>>, vector<4x1xf32>,
    } else {
    }
    %c0 = arith.constant 0 : index
    %c0_1 = arith.constant 0 : index
    %3 = vector.load %arg19[%c0, %c0_1] : memref<4x96xf32, #tpu.memory_space<vmem>>, vector<4x96xf32>
    %4 = arith.truncf %3 : vector<4x96xf32> to vector<4x96xbf16>
    %c0_2 = arith.constant 0 : index
    %c0_3 = arith.constant 0 : index
    %5 = vector.load %arg13[%c0_2, %c0_3] : memref<96x128xbf16, #tpu.memory_space<vmem>>, vector<96x128xbf16>
    %cst = arith.constant dense<0.000000e+00> : vector<4x128xf32>
    %6 = tpu.matmul %4, %5, %cst {dimension_numbers = #tpu.dot_dimension_numbers<[1], [0], [0], [1], [0, 0, 1, 1], [], []>} : vector<4x96xbf16>, vector<96x128xbf16>, vector<4x128xf32> -> vector<4x128xf32>
    %c0_4 = arith.constant 0 : index
    %c0_5 = arith.constant 0 : index
    %7 = vector.load %arg14[%c0_4, %c0_5] : memref<1x128xf32, #tpu.memory_space<vmem>>, vector<1x128xf32>
    %8 = vector.broadcast %7 : vector<1x128xf32> to vector<4x128xf32>
    %9 = arith.addf %6, %8 : vector<4x128xf32>
    %c128_i32 = arith.constant 128 : i32
    %10 = arith.muli %arg0, %c128_i32 : i32
    %11 = tpu.assume_multiple %10, 128 : i32
    %c0_6 = arith.constant 0 : index
    %12 = arith.index_cast %11 : i32 to index
    %13 = vector.load %arg15[%c0_6, %12] : memref<4x256xf32, #tpu.memory_space<vmem>>, vector<4x128xf32>
    tpu.vector_store %arg15[%c0_6, %12], %9 {strides = array<i32>} : memref<4x256xf32, #tpu.memory_space<vmem>>, vector<4x128xf32>,
    %c0_7 = arith.constant 0 : index
    %c0_8 = arith.constant 0 : index
    %14 = vector.load %arg20[%c0_7, %c0_8] : memref<4x1xf32, #tpu.memory_space<vmem>>, vector<4x1xf32>
    %cst_9 = arith.constant dense<0xFF800000> : vector<4xf32>
    %15 = vector.multi_reduction <maximumf>, %9, %cst_9 [1] : vector<4x128xf32> to vector<4xf32>
    %16 = vector.shape_cast %15 : vector<4xf32> to vector<4x1xf32>
    %17 = arith.maximumf %14, %16 : vector<4x1xf32>
    %c0_10 = arith.constant 0 : index
    %c0_11 = arith.constant 0 : index
    %18 = vector.load %arg21[%c0_10, %c0_11] : memref<4x1xf32, #tpu.memory_space<vmem>>, vector<4x1xf32>
    %19 = arith.subf %14, %17 : vector<4x1xf32>
    %20 = math.exp %19 : vector<4x1xf32>
    %21 = arith.mulf %18, %20 : vector<4x1xf32>
    %22 = vector.broadcast %17 : vector<4x1xf32> to vector<4x128xf32>
    %23 = arith.subf %9, %22 : vector<4x128xf32>
    %24 = math.exp %23 : vector<4x128xf32>
    %cst_12 = arith.constant dense<0.000000e+00> : vector<4xf32>
    %25 = vector.multi_reduction <add>, %24, %cst_12 [1] : vector<4x128xf32> to vector<4xf32>
    %26 = vector.shape_cast %25 : vector<4xf32> to vector<4x1xf32>
    %27 = arith.addf %21, %26 : vector<4x1xf32>
    %c0_13 = arith.constant 0 : index
    %c0_14 = arith.constant 0 : index
    %28 = vector.load %arg21[%c0_13, %c0_14] : memref<4x1xf32, #tpu.memory_space<vmem>>, vector<4x1xf32>
    tpu.vector_store %arg21[%c0_13, %c0_14], %27 {strides = array<i32>} : memref<4x1xf32, #tpu.memory_space<vmem>>, vector<4x1xf32>,
    %c0_15 = arith.constant 0 : index
    %c0_16 = arith.constant 0 : index
    %29 = vector.load %arg20[%c0_15, %c0_16] : memref<4x1xf32, #tpu.memory_space<vmem>>, vector<4x1xf32>
    tpu.vector_store %arg20[%c0_15, %c0_16], %17 {strides = array<i32>} : memref<4x1xf32, #tpu.memory_space<vmem>>, vector<4x1xf32>,
    %c1_i32 = arith.constant 1 : i32
    %30 = arith.cmpi eq, %arg0, %c1_i32 : i32
    %31 = arith.extui %30 : i1 to i32
    %c0_i32_17 = arith.constant 0 : i32
    %32 = arith.cmpi ne, %31, %c0_i32_17 : i32
    scf.if %32 {
      %c0_18 = arith.constant 0 : index
      %c0_19 = arith.constant 0 : index
      %33 = vector.load %arg20[%c0_18, %c0_19] : memref<4x1xf32, #tpu.memory_space<vmem>>, vector<4x1xf32>
      %c0_20 = arith.constant 0 : index
      %c0_21 = arith.constant 0 : index
      %34 = vector.load %arg21[%c0_20, %c0_21] : memref<4x1xf32, #tpu.memory_space<vmem>>, vector<4x1xf32>
      %35 = math.log %34 : vector<4x1xf32>
      %36 = arith.addf %33, %35 : vector<4x1xf32>
      %c0_22 = arith.constant 0 : index
      %c0_23 = arith.constant 0 : index
      %37 = vector.load %arg15[%c0_22, %c0_23] : memref<4x256xf32, #tpu.memory_space<vmem>>, vector<4x256xf32>
      %38 = vector.broadcast %36 : vector<4x1xf32> to vector<4x256xf32>
      %39 = arith.subf %37, %38 : vector<4x256xf32>
      %c0_24 = arith.constant 0 : index
      %c0_25 = arith.constant 0 : index
      %40 = vector.load %arg15[%c0_24, %c0_25] : memref<4x256xf32, #tpu.memory_space<vmem>>, vector<4x256xf32>
      tpu.vector_store %arg15[%c0_24, %c0_25], %39 {strides = array<i32>} : memref<4x256xf32, #tpu.memory_space<vmem>>, vector<4x256xf32>,
    } else {
    }
    return
  }
  func.func @transform_0(%arg0: i32) -> (i32, i32) {
    %c0_i32 = arith.constant 0 : i32
    %c0_i32_0 = arith.constant 0 : i32
    %c0_i32_1 = arith.constant 0 : i32
    return %c0_i32, %c0_i32_0 : i32, i32
  }
  func.func @transform_1(%arg0: i32) -> (i32, i32) {
    %c0_i32 = arith.constant 0 : i32
    %c0_i32_0 = arith.constant 0 : i32
    %c0_i32_1 = arith.constant 0 : i32
    return %c0_i32, %c0_i32_0 : i32, i32
  }
  func.func @transform_2(%arg0: i32) -> (i32, i32) {
    %c0_i32 = arith.constant 0 : i32
    %c0_i32_0 = arith.constant 0 : i32
    %c0_i32_1 = arith.constant 0 : i32
    return %c0_i32, %c0_i32_0 : i32, i32
  }
  func.func @transform_3(%arg0: i32) -> (i32, i32, i32) {
    %c0_i32 = arith.constant 0 : i32
    %c0_i32_0 = arith.constant 0 : i32
    %c0_i32_1 = arith.constant 0 : i32
    %c0_i32_2 = arith.constant 0 : i32
    return %c0_i32, %c0_i32_0, %c0_i32_1 : i32, i32, i32
  }
  func.func @transform_4(%arg0: i32) -> (i32, i32) {
    %c0_i32 = arith.constant 0 : i32
    %c0_i32_0 = arith.constant 0 : i32
    %c0_i32_1 = arith.constant 0 : i32
    return %c0_i32, %c0_i32_0 : i32, i32
  }
  func.func @transform_5(%arg0: i32) -> (i32, i32) {
    %c0_i32 = arith.constant 0 : i32
    %c0_i32_0 = arith.constant 0 : i32
    %c0_i32_1 = arith.constant 0 : i32
    return %c0_i32, %c0_i32_0 : i32, i32
  }
  func.func @transform_6(%arg0: i32) -> (i32, i32) {
    %c0_i32 = arith.constant 0 : i32
    %c0_i32_0 = arith.constant 0 : i32
    %c0_i32_1 = arith.constant 0 : i32
    return %c0_i32, %c0_i32_0 : i32, i32
  }
  func.func @transform_7(%arg0: i32) -> (i32, i32) {
    %c0_i32 = arith.constant 0 : i32
    %c0_i32_0 = arith.constant 0 : i32
    %c0_i32_1 = arith.constant 0 : i32
    return %c0_i32, %c0_i32_0 : i32, i32
  }
  func.func @transform_8(%arg0: i32) -> (i32, i32) {
    %c0_i32 = arith.constant 0 : i32
    %c0_i32_0 = arith.constant 0 : i32
    %c0_i32_1 = arith.constant 0 : i32
    return %c0_i32, %c0_i32_0 : i32, i32
  }
  func.func @transform_9(%arg0: i32) -> (i32, i32) {
    %c0_i32 = arith.constant 0 : i32
    %c0_i32_0 = arith.constant 0 : i32
    %c0_i32_1 = arith.constant 0 : i32
    return %c0_i32, %c0_i32_0 : i32, i32
  }
  func.func @transform_10(%arg0: i32) -> (i32, i32) {
    %c0_i32 = arith.constant 0 : i32
    %c0_i32_0 = arith.constant 0 : i32
    %c0_i32_1 = arith.constant 0 : i32
    return %c0_i32, %c0_i32_0 : i32, i32
  }
  func.func @transform_11(%arg0: i32) -> (i32, i32) {
    %c0_i32 = arith.constant 0 : i32
    %c0_i32_0 = arith.constant 0 : i32
    %c0_i32_1 = arith.constant 0 : i32
    return %c0_i32, %c0_i32_0 : i32, i32
  }
  func.func @transform_12(%arg0: i32) -> (i32, i32) {
    %c0_i32 = arith.constant 0 : i32
    %c0_i32_0 = arith.constant 0 : i32
    return %c0_i32, %arg0 : i32, i32
  }
  func.func @transform_13(%arg0: i32) -> (i32, i32) {
    %c0_i32 = arith.constant 0 : i32
    %c0_i32_0 = arith.constant 0 : i32
    return %c0_i32, %arg0 : i32, i32
  }
  func.func @transform_14(%arg0: i32) -> (i32, i32) {
    %c0_i32 = arith.constant 0 : i32
    %c0_i32_0 = arith.constant 0 : i32
    %c0_i32_1 = arith.constant 0 : i32
    return %c0_i32, %c0_i32_0 : i32, i32
  }
  func.func @transform_15(%arg0: i32) -> (i32, i32) {
    %c0_i32 = arith.constant 0 : i32
    %c0_i32_0 = arith.constant 0 : i32
    %c0_i32_1 = arith.constant 0 : i32
    return %c0_i32, %c0_i32_0 : i32, i32
  }
  func.func @transform_16(%arg0: i32) -> (i32, i32) {
    %c0_i32 = arith.constant 0 : i32
    %c0_i32_0 = arith.constant 0 : i32
    %c0_i32_1 = arith.constant 0 : i32
    return %c0_i32, %c0_i32_0 : i32, i32
  }
  func.func @transform_17(%arg0: i32) -> (i32, i32) {
    %c0_i32 = arith.constant 0 : i32
    %c0_i32_0 = arith.constant 0 : i32
    %c0_i32_1 = arith.constant 0 : i32
    return %c0_i32, %c0_i32_0 : i32, i32
  }
}

</mosaic_0001>

<bundles_post_ra>
// kernel: attention_decoder.1
= control target key start
LH: loop header
LB: loop body
LE: loop exit
PB: predicated region body
PF: predicated region fallthrough
CT: control target
= control target key end

     0   :  { %s2926_s0 = inlined_call_operand.vmem [shape: f32[4,16], index: 0, kind: input, shape index: {}]   ;;  %s2927_s1 = inlined_call_operand.vmem [shape: f32[4,32], index: 1, kind: input, shape index: {}, may-alias: {1,15}]   ;;  %s2928_s2 = inlined_call_operand.vmem [shape: f32[4,32], index: 2, kind: input, shape index: {}, may-alias: {2,16}]   ;;  %s2929_s3 = inlined_call_operand.vmem [shape: f32[4,8,64], index: 3, kind: input, shape index: {}]   ;;  %s2930_s4 = inlined_call_operand.vmem [shape: f32[32,32], index: 4, kind: input, shape index: {}]   ;;  %s2931_s5 = inlined_call_operand.vmem [shape: f32[64,32], index: 5, kind: input, shape index: {}]   ;;  %s2932_s6 = inlined_call_operand.vmem [shape: f32[1,32], index: 6, kind: input, shape index: {}]   ;;  %s2933_s7 = inlined_call_operand.vmem [shape: f32[1,32], index: 7, kind: input, shape index: {}]   ;;  %s2934_s8 = inlined_call_operand.vmem [shape: f32[16,128], index: 8, kind: input, shape index: {}]   ;;  %s2935_s9 = inlined_call_operand.vmem [shape: f32[64,128], index: 9, kind: input, shape index: {}]   ;;  %s2936_s10 = inlined_call_operand.vmem [shape: f32[32,128], index: 10, kind: input, shape index: {}]   ;;  %s2937_s11 = inlined_call_operand.vmem [shape: f32[1,128], index: 11, kind: input, shape index: {}]   ;;  %s2938_s12 = inlined_call_operand.vmem [shape: bf16[96,256], index: 12, kind: input, shape index: {}]   ;;  %s2939_s13 = inlined_call_operand.vmem [shape: f32[1,256], index: 13, kind: input, shape index: {}]   ;;  %s2940_s14 = inlined_call_operand.hbm [shape: f32[4,256], index: 14, kind: output, shape index: {0}]   ;;  %s2941_s15 = inlined_call_operand.vmem [shape: f32[4,32], index: 15, kind: output, shape index: {1}, may-alias: {1,15}]   ;;  %s2942_s16 = inlined_call_operand.vmem [shape: f32[4,32], index: 16, kind: output, shape index: {2}, may-alias: {2,16}]   ;;  %s2943_s17 = inlined_call_operand.hbm [shape: f32[4,8], index: 17, kind: output, shape index: {3}]  }
   0x1   :  { %2944 = sst [smem:[#allocation12_spill]] %s2926_s0 }
   0x2   :  { %2945 = sst [smem:[#allocation13_spill]] %s2927_s1 }
   0x3   :  { %2946 = sst [smem:[#allocation14_spill]] %s2938_s12 }
   0x4   :  { %23 = vsyncpa [#allocation7], 0 }
   0x5   :  { %24 = vsyncpa [#allocation9], 0  ;;  %s2607_s24 = smov 0   ;;  %s2609_s25 = smov 0  }
   0x6   :  { %s2611_s26 = smov 0  }
   0x7 LB: > { %s2623_s27 = sadd.s32 4294967295, %s2501_s26   ;;  %s2626_s28 = sadd.s32 1, %s2501_s26   ;;  %s2501_s26 = sphi %s2611_s26, %s2952_s26   ;;  %s2497_s25 = sphi %s2609_s25, %s2951_s25   ;;  %s2493_s24 = sphi %s2607_s24, %s2950_s24  }
   0x8   : > { %s286_s29 = ssub.s32 %s2501_s26, %s2626_s28  ;;  %s289_s0 = sadd.s32 1, %s2497_s25 }
   0x9   : > { %p287_p0 = scmp.eq.s32.totalorder %s286_s29, 0  ;;  %p296_p1 = scmp.ne.s32.totalorder %s2497_s25, %s2493_s24 }
   0xa   : > { %p297_p2 = scmp.eq.s32.totalorder %s2501_s26, 0  ;;  %p2104_p4 = scmp.ge.s32.totalorder %s2501_s26, 2 }
   0xb   : > { %s2635_s30 = scalar_select %p287_p0, %s2497_s25, %s289_s0  }
   0xc   : > { %p298_p3 = por %p297_p2, %p296_p1  ;;  %468 = sbr.rel (%p2104_p4) target bundleno = 35 (0x23), region = 64 }
  0x11   : > { %471 = sbr.rel (!%p298_p3) target bundleno = 35 (0x23), region = 68  ;;  %s473_s18 = sand.u32 (%p298_p3), 1, %s2497_s25  }
  0x12   : > { %s2105_s19 = sshll.u32 (%p298_p3), %s2501_s26, 2  ;;  %s2331_s1 = smul.u32 (%p298_p3), 48, %s473_s18 }
  0x13   : > { %s2947_s12 = sld [smem:[#allocation14_spill]] (%p298_p3) }
  0x14   : > { %s475_s23 = scalar_lea.vmem (%p298_p3), [#allocation5], %s2331_s1 }
  0x19   : > { %s477_s22 = scalar_lea.vmem %s2947_s12, %s2105_s19 }
  0x1a   : > { %v494_v0 = vld [vmem:[%s477_s22] sm:$0xf]  ;;  %v496_v1 = vld [vmem:[%s477_s22 + $0x8] sm:$0xf]  ;;  %v498_v2 = vld [vmem:[%s477_s22 + $0x10] sm:$0xf] }
  0x1b   : > { %v500_v3 = vld [vmem:[%s477_s22 + $0x18] sm:$0xf]  ;;  %v502_v4 = vld [vmem:[%s477_s22 + $0x20] sm:$0xf]  ;;  %495 = vst [vmem:[%s475_s23] sm:$0xf] %v494_v0 }
  0x1c   : > { %497 = vst [vmem:[%s475_s23 + $0x4] sm:$0xf] %v496_v1  ;;  %499 = vst [vmem:[%s475_s23 + $0x8] sm:$0xf] %v498_v2  ;;  %v504_v5 = vld [vmem:[%s477_s22 + $0x28] sm:$0xf] }
  0x1d   : > { %501 = vst [vmem:[%s475_s23 + $0xc] sm:$0xf] %v500_v3  ;;  %503 = vst [vmem:[%s475_s23 + $0x10] sm:$0xf] %v502_v4  ;;  %v506_v6 = vld [vmem:[%s477_s22 + $0x30] sm:$0xf] }
  0x1e   : > { %v508_v7 = vld [vmem:[%s477_s22 + $0x38] sm:$0xf]  ;;  %505 = vst [vmem:[%s475_s23 + $0x14] sm:$0xf] %v504_v5  ;;  %507 = vst [vmem:[%s475_s23 + $0x18] sm:$0xf] %v506_v6 }
  0x1f   : > { %509 = vst [vmem:[%s475_s23 + $0x1c] sm:$0xf] %v508_v7  ;;  %v510_v8 = vld [vmem:[%s477_s22 + $0x40] sm:$0xf]  ;;  %v512_v9 = vld [vmem:[%s477_s22 + $0x48] sm:$0xf] }
  0x20   : > { %v514_v10 = vld [vmem:[%s477_s22 + $0x50] sm:$0xf]  ;;  %511 = vst [vmem:[%s475_s23 + $0x20] sm:$0xf] %v510_v8  ;;  %513 = vst [vmem:[%s475_s23 + $0x24] sm:$0xf] %v512_v9 }
  0x21   : > { %515 = vst [vmem:[%s475_s23 + $0x28] sm:$0xf] %v514_v10  ;;  %v516_v11 = vld [vmem:[%s477_s22 + $0x58] sm:$0xf] }
  0x22   : > { %517 = vst [vmem:[%s475_s23 + $0x2c] sm:$0xf] %v516_v11 }
  0x23 PF: > { %p2106_p5 = scmp.ge.s32.totalorder %s2501_s26, 1  ;;  %p570_p6 = scmp.lt.s32.totalorder %s2501_s26, 3 }
  0x25   : > { %p571_p7 = pnand %p2106_p5, %p570_p6 }
  0x26   : > { %s577_s29 = sand.u32 (!%p571_p7), 1, %s2493_s24   ;;  %p626_p8 = scmp.lt.s32.totalorder (!%p571_p7), %s2623_s27, 1 }
  0x27   : > { %574 = sbr.rel (%p571_p7) target bundleno = 2538 (0x9ea), region = 113  ;;  %p2107_p9 = scmp.ne.s32.totalorder (!%p571_p7), %s2623_s27, 0 }
  0x28   : > { %s2332_s0 = smul.u32 (!%p571_p7), 48, %s577_s29 }
  0x2a   : > { %s2654_s21 = scalar_lea.vmem (!%p571_p7), [#allocation5], %s2332_s0 }
  0x2c   : > { %s2648_s18 = scalar_select %p626_p8, %s2623_s27, 1 }
  0x2d   : > { %633 = sbr.rel (%p2107_p9) target bundleno = 1711 (0x6af), region = 121  ;;  %s2948_s26 = sld [smem:[#allocation13_spill]] (!%p2107_p9) }
  0x2e   : > { %s628_s20 = scalar_lea.vmem %s2939_s13, %s2648_s18  ;;  %s2949_s22 = sld [smem:[#allocation12_spill]] (!%p2107_p9) }
  0x2f   : > { %s2507_s23 = smov (!%p2107_p9), 32   ;;  %s2508_s24 = smov (!%p2107_p9), 96  }
  0x32   : > { %v725_v12 = vld [vmem:[%s2931_s5 + $0x38] sm:$0xff]  ;;  %v724_v14 = vld [vmem:[%s2931_s5 + $0x30] sm:$0xff]  ;;  %v2503_v15 = vmov 0.0   ;;  %v723_v17 = vld [vmem:[%s2931_s5 + $0x28] sm:$0xff]  ;;  %vm644_vm0 = vcmask 261120   ;;  %vm726_vm1 = vcmask 523264   ;;  %v828_v32 = vlaneseq }
  0x33   : > { %v643_v13 = vld [vmem:[%s2930_s4 + $0x18] sm:$0xff]  ;;  %2205 = vmatprep.subr.mxu0 %v2503_v15  ;;  %2216 = vmatprep.subr.mxu1 %v725_v12  ;;  %v642_v16 = vld [vmem:[%s2930_s4 + $0x10] sm:$0xff]  ;;  %v641_v18 = vld [vmem:[%s2930_s4 + $0x8] sm:$0xff]  ;;  %vm2504_vm2 = vmmov 0   ;;  %v2505_v30 = vmov 1966171168  }
  0x34   : > { %2206 = vmatpush3.msra.mxu0 %v643_v13  ;;  %2217 = vmatpush3.msra.mxu1 %v725_v12  ;;  %v722_v19 = vld [vmem:[%s2931_s5 + $0x20] sm:$0xff]  ;;  %v721_v22 = vld [vmem:[%s2931_s5 + $0x18] sm:$0xff]  ;;  %v720_v24 = vld [vmem:[%s2931_s5 + $0x10] sm:$0xff]  ;;  %v826_v31 = vunpack.c.l.s4 %v2505_v30  ;;  %v829_v34 = vshrl.u32 %v828_v32, 7  ;;  %vm1189_vm3 = vcmask 1041409   ;;  %vm1192_vm4 = vcmask 1042434  }
  0x35   : > { %2207 = vmatprep.subr.mxu0 %v2503_v15  ;;  %2218 = vmatprep.subr.mxu1 %v724_v14  ;;  %v640_v20 = vld [vmem:[%s2930_s4] sm:$0xff]  ;;  %v719_v25 = vld [vmem:[%s2931_s5 + $0x8] sm:$0xff]  ;;  %v2721_v28 = vld [vmem:[%s2929_s3 + $0x10] sm:$0xff]  ;;  %vm1195_vm5 = vcmask 1043459   ;;  %vm1198_vm6 = vcmask 60416   ;;  %vm1261_vm7 = vcmask 64512  }
  0x36   : > { %2208 = vmatpush3.msra.mxu0 %v642_v16  ;;  %2219 = vmatpush3.msra.mxu1 %v724_v14  ;;  %v2687_v21 = vld [vmem:[%s2948_s26] sm:$0xf]  ;;  %v2716_v27 = vld [vmem:[%s2929_s3 + $0x8] sm:$0xff]  ;;  %v2731_v29 = vld [vmem:[%s2929_s3 + $0x18] sm:$0xff]  ;;  %v827_v33 = vunpack.c.0.s8 %v826_v31  ;;  %v851_v41 = vsub.s32 0, %v829_v34  ;;  %vm1643_vm8 = vcmask 130048  }
  0x37   : > { %2209 = vmatprep.subr.mxu0 %v2503_v15  ;;  %2220 = vmatprep.subr.mxu1 %v723_v17  ;;  %v636_v23 = vld [vmem:[%s2929_s3] sm:$0xff]  ;;  %s2506_s26 = smov 64   ;;  %vm1845_vm9 = vcmask 3072   ;;  %vm1832_vm10 = vcmask 257024   ;;  %vm1843_vm11 = vcmask 781568  }
  0x38   : > { %2210 = vmatpush3.msra.mxu0 %v641_v18  ;;  %2221 = vmatpush3.msra.mxu1 %v723_v17  ;;  %v718_v26 = vld [vmem:[%s2931_s5] sm:$0xff]  ;;  %v830_v35 = vsub.s32 %v827_v33, %v829_v34  ;;  %1847 = vst.msk [vmem:[#allocation4] sm:$0xf] %vm1845_vm9, %v2503_v15 }
  0x39   : > { %2211 = vmatprep.subr.mxu0 %v2503_v15  ;;  %2222 = vmatprep.subr.mxu1 %v722_v19  ;;  %v2113_v51 = vld [vmem:[%s2932_s6] ss:$0 sm:$0xff] }
  0x3a   : > { %2212 = vmatpush3.msra.mxu0 %v640_v20  ;;  %2213 = vmatprep.mubr.msk.f32.mxu0 %vm2504_vm2, %v2503_v15  ;;  %v888_v63 = vld [vmem:[%s2933_s7] sm:$0x1] }
  0x3b   : > { %2223 = vmatpush3.msra.mxu1 %v722_v19  ;;  %2214 = vmatmul.mubr.msk.f32.vlgmr.msra.gmra.mxu0 %vm644_vm0, %v2687_v21 }
  0x3c   : > { %2224 = vmatprep.subr.mxu1 %v721_v22  ;;  %2232 = vmatprep.mubr.msk.f32.mxu1 %vm726_vm1, %v636_v23 }
  0x3d   : > { %2225 = vmatpush3.msra.mxu1 %v721_v22  ;;  %2238 = vmatprep.subr.mxu0 %v2503_v15 }
  0x3e   : > { %2226 = vmatprep.subr.mxu1 %v720_v24  ;;  %2240 = vmatprep.mubr.msk.f32.mxu0 %vm2504_vm2, %v2503_v15 }
  0x3f   : > { %2227 = vmatpush3.msra.mxu1 %v720_v24 }
  0x40   : > { %2228 = vmatprep.subr.mxu1 %v719_v25 }
  0x41   : > { %2229 = vmatpush3.msra.mxu1 %v719_v25 }
  0x42   : > { %2230 = vmatprep.subr.mxu1 %v718_v26 }
  0x43   : > { %2231 = vmatpush3.msra.mxu1 %v718_v26 }
  0x44   : > { %2233 = vmatmul.mubr.msk.f32.vlgmr.msra.gmra.mxu1 %vm726_vm1, %v2716_v27  ;;  %2258 = vmatprep.subr.mxu1 %v2503_v15 }
  0x45   : > { %2235 = vmatprep.mubr.msk.f32.mxu1 %vm726_vm1, %v2721_v28  ;;  %2259 = vmatpush3.msra.mxu1 %v636_v23 }
  0x46   : > { %2268 = vmatprep.subr.mxu1 %v2503_v15 }
  0x48   : > { %2236 = vmatmul.mubr.msk.f32.gmra.mxu1 %vm726_vm1, %v2731_v29 }
  0x49   : > { %2260 = vmatprep.mubr.msk.f32.mxu1 %vm2504_vm2, %v2503_v15 }
  0xfb   : > { %v714_v36 = vpop.f32.mrf.mxu0 }
  0xfc   : > { %v831_v37 = vrot.slane %v714_v36, %v830_v35 }
  0xfd   : > { %v2215_v38 = vpop.f32.mrf.mxu0 }
  0xfe   : > { %v832_v39 = vcombine.high %v831_v37, %v831_v37  ;;  %v839_v40 = vrot.slane %v831_v37, %v830_v35 }
 0x100   : > { %v846_v42 = vrot.slane %v832_v39, %v830_v35  ;;  %v852_v44 = vrot.slane %v839_v40, %v851_v41  ;;  %v847_v46 = vcombine.high %v839_v40, %v839_v40 }
 0x102   : > { %v856_v43 = vrot.slane %v846_v42, %v851_v41  ;;  %v848_v50 = vcombine.high %v846_v42, %v846_v42  ;;  %v860_v54 = vrot.slane %v847_v46, %v851_v41 }
 0x104   : > { %v2234_v45 = vpop.f32.mrf.mxu1  ;;  %v864_v57 = vrot.slane %v848_v50, %v851_v41 }
 0x105   : > { %v870_v48 = vadd.f32 %v2234_v45, %v856_v43 }
 0x106   : > { %v805_v47 = vpop.f32.mrf.mxu1 }
 0x107   : > { %v869_v49 = vadd.f32 %v852_v44, %v805_v47  ;;  %v881_v56 = vadd.f32 %v2113_v51, %v870_v48 }
 0x108   : > { %v2237_v52 = vpop.f32.mrf.mxu1 }
 0x109   : > { %v880_v53 = vadd.f32 %v2113_v51, %v869_v49  ;;  %v872_v59 = vadd.f32 %v2237_v52, %v864_v57 }
 0x10a   : > { %v815_v55 = vpop.f32.mrf.mxu1 }
 0x10b   : > { %2383 = vtanh.f32 %v880_v53  ;;  %v871_v58 = vadd.f32 %v860_v54, %v815_v55  ;;  %v883_v61 = vadd.f32 %v2113_v51, %v872_v59 }
 0x10c   : > { %2385 = vtanh.f32 %v881_v56  ;;  %v1560_v56 = vld [vmem:[%s2935_s9 + $0x38] sm:$0xff] }
 0x10d   : > { %v882_v60 = vadd.f32 %v2113_v51, %v871_v58  ;;  %v1559_v58 = vld [vmem:[%s2935_s9 + $0x30] sm:$0xff] }
 0x10f   : > { %2387 = vtanh.f32 %v882_v60  ;;  %v1558_v60 = vld [vmem:[%s2935_s9 + $0x28] sm:$0xff] }
 0x110   : > { %2389 = vtanh.f32 %v883_v61  ;;  %v1552_v61 = vld [vmem:[%s2934_s8 + $0x8] sm:$0xff] }
 0x118   : > { %v2384_v62 = vpop.eup %2383 }
 0x119   : > { %2239 = vmatpush3.xpose.msk.msra.mxu0 %vm644_vm0, %v2384_v62  ;;  %v2386_v0 = vpop.eup %2385  ;;  %v1557_v62 = vld [vmem:[%s2935_s9 + $0x20] sm:$0xff] }
 0x11a   : > { %2243 = vmatprep.subr.mxu0 %v2503_v15 }
 0x11c   : > { %2241 = vmatmul.mubr.msk.f32.vlgmr.msra.gmra.mxu0 %vm644_vm0, %v888_v63  ;;  %v2388_v1 = vpop.eup %2387 }
 0x11d   : > { %2244 = vmatpush3.xpose.msk.msra.mxu0 %vm644_vm0, %v2386_v0  ;;  %2245 = vmatprep.mubr.msk.f32.mxu0 %vm2504_vm2, %v2503_v15  ;;  %v2390_v2 = vpop.eup %2389  ;;  %v1556_v0 = vld [vmem:[%s2935_s9 + $0x18] sm:$0xff] }
 0x11e   : > { %2248 = vmatprep.subr.mxu0 %v2503_v15 }
 0x120   : > { %2246 = vmatmul.mubr.msk.f32.vlgmr.msra.gmra.mxu0 %vm644_vm0, %v888_v63 }
 0x121   : > { %2249 = vmatpush3.xpose.msk.msra.mxu0 %vm644_vm0, %v2388_v1  ;;  %2250 = vmatprep.mubr.msk.f32.mxu0 %vm2504_vm2, %v2503_v15  ;;  %v1550_v1 = vld [vmem:[%s2949_s22] sm:$0xf] }
 0x122   : > { %2253 = vmatprep.subr.mxu0 %v2503_v15 }
 0x124   : > { %2251 = vmatmul.mubr.msk.f32.vlgmr.msra.gmra.mxu0 %vm644_vm0, %v888_v63 }
 0x125   : > { %2254 = vmatpush3.xpose.msk.msra.mxu0 %vm644_vm0, %v2390_v2  ;;  %2255 = vmatprep.mubr.msk.f32.mxu0 %vm2504_vm2, %v2503_v15  ;;  %v1720_v2 = vld [vmem:[%s2936_s10 + $0x18] sm:$0xff] }
 0x126   : > { %2263 = vmatprep.subr.mxu0 %v2503_v15 }
 0x128   : > { %2256 = vmatmul.mubr.msk.f32.vlgmr.msra.gmra.mxu0 %vm644_vm0, %v888_v63  ;;  %v1551_v63 = vld [vmem:[%s2934_s8] sm:$0xff] }
 0x129   : > { %2264 = vmatpush3.msra.mxu0 %v2716_v27  ;;  %2265 = vmatprep.mubr.msk.f32.mxu0 %vm2504_vm2, %v2503_v15 }
 0x12a   : > { %2273 = vmatprep.subr.mxu0 %v2503_v15 }
 0x1dc   : > { %v961_v3 = vpop.f32.mrf.mxu0 }
 0x1de   : > { %v2242_v4 = vpop.f32.mrf.mxu0 }
 0x1df   : > { %v1719_v4 = vld [vmem:[%s2936_s10 + $0x10] sm:$0xff] }
 0x1e0   : > { %v1034_v5 = vpop.f32.mrf.mxu0 }
 0x1e1   : > { %v1188_v8 = vrot.slane %v1034_v5, 7 }
 0x1e2   : > { %v2247_v6 = vpop.f32.mrf.mxu0 }
 0x1e3   : > { %v1190_v13 = vsel %vm1189_vm3, %v1188_v8, %v961_v3  ;;  %v1718_v6 = vld [vmem:[%s2936_s10 + $0x8] sm:$0xff]  ;;  %v1717_v8 = vld [vmem:[%s2936_s10] sm:$0xff] }
 0x1e4   : > { %v1107_v7 = vpop.f32.mrf.mxu0 }
 0x1e5   : > { %v1191_v9 = vrot.slane %v1107_v7, 6 }
 0x1e6   : > { %v2252_v10 = vpop.f32.mrf.mxu0 }
 0x1e7   : > { %v1193_v16 = vsel %vm1192_vm4, %v1191_v9, %v1190_v13 }
 0x1e8   : > { %v1180_v11 = vpop.f32.mrf.mxu0 }
 0x1e9   : > { %v1194_v12 = vrot.slane %v1180_v11, 5 }
 0x1ea   : > { %v2257_v14 = vpop.f32.mrf.mxu0 }
 0x1eb   : > { %v1196_v17 = vsel %vm1195_vm5, %v1194_v12, %v1193_v16 }
 0x1ec   : > { %v1199_v18 = vsel %vm1198_vm6, %v1196_v17, -inf }
 0x1ed   : > { %1200 = vmax.xlane.f32.xlu0 %v1199_v18 }
 0x276   : > { %v1201_v19 = vpop.xlane.xlu0 %1200 }
 0x277   : > { %v1203_v20 = vrot.slane %v1201_v19, 1  ;;  %v1204_v22 = vrot.slane %v1201_v19, 2  ;;  %v1205_v23 = vrot.slane %v1201_v19, 3  ;;  %v1210_v24 = vsub.f32 %v961_v3, %v1201_v19  ;;  %v1555_v3 = vld [vmem:[%s2935_s9 + $0x10] sm:$0xff] }
 0x279   : > { %v1211_v25 = vsub.f32 %v1034_v5, %v1203_v20  ;;  %v1212_v26 = vsub.f32 %v1107_v7, %v1204_v22  ;;  %v1213_v27 = vsub.f32 %v1180_v11, %v1205_v23  ;;  %v1214_v30 = vmul.f32 1.442695, %v1210_v24  ;;  %v1554_v5 = vld [vmem:[%s2935_s9 + $0x8] sm:$0xff]  ;;  %v1553_v7 = vld [vmem:[%s2935_s9] sm:$0xff] }
 0x27b   : > { %v1216_v31 = vmul.f32 1.442695, %v1211_v25  ;;  %v1218_v32 = vmul.f32 1.442695, %v1212_v26  ;;  %v1220_v33 = vmul.f32 1.442695, %v1213_v27  ;;  %2391 = vpow2.f32 %v1214_v30 }
 0x27d   : > { %2393 = vpow2.f32 %v1216_v31 }
 0x27e   : > { %2395 = vpow2.f32 %v1218_v32  ;;  %v2129_v32 = vld [vmem:[%s2937_s11] ss:$0 sm:$0xff] }
 0x27f   : > { %2397 = vpow2.f32 %v1220_v33 }
 0x288   : > { %v2392_v34 = vpop.eup %2391 }
 0x28a   : > { %v2394_v35 = vpop.eup %2393 }
 0x28b   : > { %v2396_v36 = vpop.eup %2395  ;;  %v1226_v37 = vrot.slane %v2394_v35, 7 }
 0x28c   : > { %v2398_v38 = vpop.eup %2397  ;;  %v1228_v39 = vrot.slane %v2396_v36, 6 }
 0x28d   : > { %v1227_v40 = vsel %vm1189_vm3, %v1226_v37, %v2392_v34  ;;  %v1230_v41 = vrot.slane %v2398_v38, 5  ;;  %v635_v37 = vld [vmem:[%s2928_s2] sm:$0xf] }
 0x28e   : > { %v1229_v42 = vsel %vm1192_vm4, %v1228_v39, %v1227_v40 }
 0x28f   : > { %v1231_v43 = vsel %vm1195_vm5, %v1230_v41, %v1229_v42 }
 0x290   : > { %v1233_v44 = vsel %vm1198_vm6, %v1231_v43, 0.0 }
 0x291   : > { %1234 = vadd.xlane.f32.xlu0 %v1233_v44 }
 0x31a   : > { %v1235_v45 = vpop.xlane.xlu0 %1234 }
 0x31b   : > { %2399 = vrcp.f32 %v1235_v45 }
 0x328   : > { %v2400_v46 = vpop.eup %2399 }
 0x329   : > { %v1245_v47 = vmul.f32 %v2400_v46, %v2392_v34  ;;  %v1238_v48 = vrot.slane %v2400_v46, 1  ;;  %v1239_v49 = vrot.slane %v2400_v46, 2  ;;  %v1240_v50 = vrot.slane %v2400_v46, 3 }
 0x32b   : > { %2261 = vmatmul.mubr.msk.f32.vlgmr.msra.gmra.mxu1 %vm1261_vm7, %v1245_v47  ;;  %v1246_v51 = vmul.f32 %v2394_v35, %v1238_v48  ;;  %v1247_v52 = vmul.f32 %v2396_v36, %v1239_v49  ;;  %v1248_v53 = vmul.f32 %v2398_v38, %v1240_v50  ;;  %v2509_v49 = vmov -inf  }
 0x32c   : > { %2269 = vmatpush3.msra.mxu1 %v2721_v28  ;;  %2270 = vmatprep.mubr.msk.f32.mxu1 %vm2504_vm2, %v2503_v15  ;;  %1846 = vst.msk [vmem:[#allocation3] sm:$0xf] %vm1845_vm9, %v2509_v49 }
 0x32d   : > { %v1253_v54 = vrot.slane %v1246_v51, 7  ;;  %2266 = vmatmul.mubr.msk.f32.vlgmr.msra.gmra.mxu0 %vm1261_vm7, %v1246_v51  ;;  %v1255_v55 = vrot.slane %v1247_v52, 6  ;;  %2278 = vmatprep.subr.mxu1 %v2503_v15  ;;  %v1257_v57 = vrot.slane %v1248_v53, 5 }
 0x32e   : > { %2274 = vmatpush3.msra.mxu0 %v2731_v29  ;;  %2275 = vmatprep.mubr.msk.f32.mxu0 %vm2504_vm2, %v2503_v15 }
 0x32f   : > { %v1254_v28 = vsel %vm1189_vm3, %v1253_v54, %v1245_v47  ;;  %2271 = vmatmul.mubr.msk.f32.vlgmr.msra.gmra.mxu1 %vm1261_vm7, %v1247_v52  ;;  %2297 = vmatprep.subr.mxu0 %v2503_v15 }
 0x330   : > { %v1256_v59 = vsel %vm1192_vm4, %v1255_v55, %v1254_v28  ;;  %2279 = vmatpush3.msra.mxu1 %v1560_v56  ;;  %2294 = vmatprep.mubr.msk.f32.mxu1 %vm2504_vm2, %v2503_v15 }
 0x331   : > { %v1258_v29 = vsel %vm1195_vm5, %v1257_v57, %v1256_v59  ;;  %2276 = vmatmul.mubr.msk.f32.vlgmr.msra.gmra.mxu0 %vm1261_vm7, %v1248_v53  ;;  %2280 = vmatprep.subr.mxu1 %v2503_v15 }
 0x332   : > { %1260 = vst.msk [vmem:[#allocation8] sm:$0xf] %vm1198_vm6, %v1258_v29  ;;  %2281 = vmatpush3.msra.mxu1 %v1559_v58  ;;  %2301 = vmatprep.mubr.msk.f32.mxu0 %vm2504_vm2, %v2503_v15 }
 0x333   : > { %2282 = vmatprep.subr.mxu1 %v2503_v15  ;;  %2298 = vmatpush3.msra.mxu0 %v1552_v61 }
 0x334   : > { %2283 = vmatpush3.msra.mxu1 %v1558_v60  ;;  %2299 = vmatprep.subr.mxu0 %v2503_v15 }
 0x335   : > { %2284 = vmatprep.subr.mxu1 %v2503_v15  ;;  %2300 = vmatpush3.msra.mxu0 %v1551_v63 }
 0x336   : > { %2285 = vmatpush3.msra.mxu1 %v1557_v62  ;;  %2304 = vmatprep.subr.mxu0 %v2503_v15 }
 0x337   : > { %2286 = vmatprep.subr.mxu1 %v2503_v15  ;;  %2302 = vmatmul.mubr.msk.f32.vlgmr.msra.gmra.mxu0 %vm1643_vm8, %v1550_v1 }
 0x338   : > { %2287 = vmatpush3.msra.mxu1 %v1556_v0  ;;  %2305 = vmatpush3.msra.mxu0 %v1720_v2 }
 0x339   : > { %2288 = vmatprep.subr.mxu1 %v2503_v15  ;;  %2306 = vmatprep.subr.mxu0 %v2503_v15 }
 0x33a   : > { %2289 = vmatpush3.msra.mxu1 %v1555_v3  ;;  %2307 = vmatpush3.msra.mxu0 %v1719_v4 }
 0x33b   : > { %2290 = vmatprep.subr.mxu1 %v2503_v15  ;;  %2308 = vmatprep.subr.mxu0 %v2503_v15 }
 0x33c   : > { %2291 = vmatpush3.msra.mxu1 %v1554_v5  ;;  %2309 = vmatpush3.msra.mxu0 %v1718_v6 }
 0x33d   : > { %2292 = vmatprep.subr.mxu1 %v2503_v15  ;;  %2310 = vmatprep.subr.mxu0 %v2503_v15 }
 0x33e   : > { %2293 = vmatpush3.msra.mxu1 %v1553_v7  ;;  %2311 = vmatpush3.msra.mxu0 %v1717_v8 }
 0x33f   : > { %2312 = vmatprep.mubr.msk.f32.mxu0 %vm2504_vm2, %v2503_v15 }
 0x340   : > { %2313 = vmatmul.mubr.msk.f32.vlgmr.msra.gmra.mxu0 %vm644_vm0, %v2687_v21 }
 0x3eb   : > { %v1330_v9 = vpop.f32.mrf.mxu1 }
 0x3ed   : > { %v2262_v10 = vpop.f32.mrf.mxu1  ;;  %v1402_v11 = vpop.f32.mrf.mxu0 }
 0x3ee   : > { %v1565_v12 = vrot.slane %v1402_v11, 7 }
 0x3ef   : > { %v2267_v13 = vpop.f32.mrf.mxu0  ;;  %v1474_v14 = vpop.f32.mrf.mxu1 }
 0x3f0   : > { %v1566_v16 = vsel %vm1189_vm3, %v1565_v12, %v1330_v9  ;;  %v1567_v17 = vrot.slane %v1474_v14, 6 }
 0x3f1   : > { %v2272_v18 = vpop.f32.mrf.mxu1  ;;  %v1546_v19 = vpop.f32.mrf.mxu0 }
 0x3f2   : > { %v1568_v20 = vsel %vm1192_vm4, %v1567_v17, %v1566_v16  ;;  %v1569_v22 = vrot.slane %v1546_v19, 5 }
 0x3f3   : > { %v2277_v23 = vpop.f32.mrf.mxu0 }
 0x3f4   : > { %v1570_v24 = vsel %vm1195_vm5, %v1569_v22, %v1568_v20 }
 0x3f5   : > { %2295 = vmatmul.mubr.msk.f32.vlgmr.msra.gmra.mxu1 %vm726_vm1, %v1570_v24 }
 0x3f7   : > { %v1713_v21 = vpop.f32.mrf.mxu0 }
 0x3f9   : > { %v2303_v25 = vpop.f32.mrf.mxu0 }
 0x400   : > { %v1787_v26 = vpop.f32.mrf.mxu0 }
 0x402   : > { %v2314_v27 = vpop.f32.mrf.mxu0 }
 0x4b5   : > { %v1639_v30 = vpop.f32.mrf.mxu1 }
 0x4b6   : > { %v1714_v31 = vadd.f32 %v1713_v21, %v1639_v30 }
 0x4b7   : > { %v2296_v33 = vpop.f32.mrf.mxu1 }
 0x4b8   : > { %v1791_v34 = vadd.f32 %v1787_v26, %v1714_v31 }
 0x4ba   : > { %v1799_v35 = vadd.f32 %v2129_v32, %v1791_v34 }
 0x4bc   : > { %2401 = vtanh.f32 %v1799_v35  ;;  %v2130_v38 = vmul.f32 -1.442695, %v1799_v35 }
 0x4be   : > { %2403 = vpow2.f32 %v2130_v38 }
 0x4c9   : > { %v2402_v36 = vpop.eup %2401 }
 0x4ca   : > { %1813 = vrot.lane.b32.xlu1 %v2402_v36, %s2506_s26 }
 0x4cb   : > { %v2404_v39 = vpop.eup %2403 }
 0x4cc   : > { %v1803_v40 = vadd.f32 1.0, %v2404_v39 }
 0x4ce   : > { %1808 = vrot.lane.b32.xlu1 %v635_v37, %s2507_s23  ;;  %2405 = vrcp.f32 %v1803_v40 }
 0x4db   : > { %v2406_v41 = vpop.eup %2405 }
 0x53c   : > { %v1814_v42 = vpop.permute.xlu1 %1813 }
 0x53d   : > { %v1816_v43 = vmul.f32 %v2406_v41, %v1814_v42 }
 0x53f   : > { %1818 = vrot.lane.b32.xlu0 %v1816_v43, %s2507_s23 }
 0x540   : > { %v1809_v44 = vpop.permute.xlu1 %1808 }
 0x541   : > { %v1811_v45 = vmul.f32 %v2406_v41, %v1809_v44 }
 0x5b1   : > { %v1819_v46 = vpop.permute.xlu0 %1818 }
 0x5b2   : > { %v1821_v47 = vadd.f32 %v1819_v46, %v1811_v45 }
 0x5b4   : > { %2407 = vtanh.f32 %v1821_v47 }
 0x5c1   : > { %v2408_v48 = vpop.eup %2407 }
 0x5c2   : > { %1824 = vrot.lane.b32.xlu1 %v2408_v48, %s2506_s26 }
 0x5c6   : > { %1835 = vrot.lane.b32.xlu1 %v1821_v47, %s2508_s24 }
 0x634   : > { %v1825_v50 = vpop.permute.xlu1 %1824 }
 0x635   : > { %v1827_v51 = vmul.f32 %v2406_v41, %v1825_v50 }
 0x637   : > { %1829 = vrot.lane.b32.xlu1 %v1827_v51, %s2507_s23 }
 0x638   : > { %v1836_v52 = vpop.permute.xlu1 %1835 }
 0x639   : > { %1838 = vst.msk [vmem:[%s2942_s16] sm:$0xf] %vm1832_vm10, %v1836_v52 }
 0x63b   : > { %1840 = vrot.lane.b32.xlu1 %v1570_v24, %s2507_s23 }
 0x6a9   : > { %v1830_v53 = vpop.permute.xlu1 %1829 }
 0x6aa   : > { %1833 = vst.msk [vmem:[%s2941_s15] sm:$0xf] %vm1832_vm10, %v1830_v53  ;;  %1839 = vst.msk [vmem:[#allocation2] sm:$0xf] %vm1832_vm10, %v1830_v53 }
 0x6ad   : > { %v1841_v15 = vpop.permute.xlu1 %1840 }
 0x6ae   : > { %1844 = vst.msk [vmem:[#allocation2] sm:$0xf] %vm1843_vm11, %v1841_v15 }
 0x6af PF: > { %v2410_v54 = vld [vmem:[%s2654_s21 + $0x28] sm:$0xff]   ;;  %v2510_v55 = vmov 0.0   ;;  %v2411_v56 = vld [vmem:[%s2654_s21 + $0x20] sm:$0xff]   ;;  %vm2511_vm12 = vmmov 0   ;;  %v2412_v28 = vld [vmem:[%s2654_s21 + $0x18] sm:$0xff]   ;;  %vm1905_vm13 = vcmask 785408  }
 0x6b0   : > { %2315 = vmatprep.subr.bf16.mxu0 %v2510_v55  ;;  %2327 = vmatprep.mubr.msk.bf16.mxu0 %vm2511_vm12, %v2510_v55  ;;  %v2413_v57 = vld [vmem:[%s2654_s21 + $0x10] sm:$0xff]   ;;  %v2414_v58 = vld [vmem:[%s2654_s21 + $0x8] sm:$0xff]   ;;  %v2415_v59 = vld [vmem:[%s2654_s21] sm:$0xff]   ;;  %s2139_s26 = sshll.u32 %s2623_s27, 7  ;;  %vm1956_vm14 = vcmask 1043456   ;;  %v2512_v4 = vmov 0  }
 0x6b1   : > { %2316 = vmatpush3.bf16.msra.mxu0 %v2410_v54  ;;  %s1950_s22 = sshra.s32 %s2139_s26, 7  ;;  %v2131_v61 = vld [vmem:[%s628_s20] ss:$0 sm:$0xff]  ;;  %2409 = vset.pattern.permute.xlu0 %v2512_v4  ;;  %v1955_v5 = vld [vmem:[#allocation3] sm:$0xf]  ;;  %vm1978_vm15 = vcmask 3072  }
 0x6b2   : > { %2317 = vmatprep.subr.bf16.mxu0 %v2510_v55  ;;  %s2140_s12 = sshll.u32 %s1950_s22, 2  ;;  %v1961_v17 = vld [vmem:[#allocation4] sm:$0xf]  ;;  %p2141_p10 = scmp.ne.s32.totalorder %s2623_s27, 1 }
 0x6b3   : > { %s1953_s29 = scalar_lea.vmem [#allocation6], %s2140_s12 }
 0x6b5   : > { %2318 = vmatpush3.bf16.msra.mxu0 %v2411_v56  ;;  %v1848_v29 = vld [vmem:[#allocation2] sm:$0xf] }
 0x6b6   : > { %2319 = vmatprep.subr.bf16.mxu0 %v2510_v55  ;;  %v1849_v60 = vpack.c.bf16 %v1848_v29, %v1848_v29 }
 0x6b9   : > { %2320 = vmatpush3.bf16.msra.mxu0 %v2412_v28 }
 0x6ba   : > { %2321 = vmatprep.subr.bf16.mxu0 %v2510_v55 }
 0x6bd   : > { %2322 = vmatpush3.bf16.msra.mxu0 %v2413_v57 }
 0x6be   : > { %2323 = vmatprep.subr.bf16.mxu0 %v2510_v55 }
 0x6c1   : > { %2324 = vmatpush3.bf16.msra.mxu0 %v2414_v58 }
 0x6c2   : > { %2325 = vmatprep.subr.bf16.mxu0 %v2510_v55 }
 0x6c5   : > { %2326 = vmatpush3.bf16.msra.mxu0 %v2415_v59 }
 0x6c8   : > { %2328 = vmatmul.mubr.msk.bf16.vlgmr.msra.gmra.mxu0 %vm1905_vm13, %v1849_v60 }
 0x788   : > { %v1943_v62 = vpop.f32.mrf.mxu0 }
 0x789   : > { %v1944_v63 = vadd.f32 %v2131_v61, %v1943_v62 }
 0x78a   : > { %v2329_v0 = vpop.f32.mrf.mxu0 }
 0x78b   : > { %1954 = vst [vmem:[%s1953_s29] sm:$0xf] %v1944_v63  ;;  %v1957_v1 = vsel %vm1956_vm14, %v1944_v63, -inf }
 0x78c   : > { %1958 = vmax.xlane.f32.xlu0 %v1957_v1  ;;  %v1946_v2 = vpop.f32.mrf.mxu0 }
 0x78e   : > { %v2330_v3 = vpop.f32.mrf.mxu0 }
 0x815   : > { %v1959_v6 = vpop.xlane.xlu0 %1958 }
 0x816   : > { %v1960_v7 = vmax.f32 %v1955_v5, %v1959_v6 }
 0x818   : > { %v1962_v8 = vsub.f32 %v1955_v5, %v1960_v7  ;;  %1980 = vst.msk [vmem:[#allocation3] sm:$0xf] %vm1978_vm15, %v1960_v7  ;;  %1968 = vperm.xlu0 %2409, %v1960_v7  }
 0x81a   : > { %v1963_v14 = vmul.f32 1.442695, %v1962_v8 }
 0x893   : > { %v1969_v9 = vpop.permute.xlu0 %1968 }
 0x894   : > { %v1971_v10 = vsub.f32 %v1944_v63, %v1969_v9 }
 0x896   : > { %v1972_v11 = vmul.f32 1.442695, %v1971_v10 }
 0x898   : > { %2416 = vpow2.f32 %v1972_v11 }
 0x899   : > { %2418 = vpow2.f32 %v1963_v14 }
 0x8a5   : > { %v2417_v12 = vpop.eup %2416 }
 0x8a6   : > { %v1974_v13 = vsel %vm1956_vm14, %v2417_v12, 0.0  ;;  %v2419_v16 = vpop.eup %2418 }
 0x8a7   : > { %1975 = vadd.xlane.f32.xlu1 %v1974_v13  ;;  %v1965_v18 = vmul.f32 %v2419_v16, %v1961_v17 }
 0x92f   : > { %1984 = sbr.rel (%p2141_p10) target bundleno = 2510 (0x9ce), region = 125 }
 0x930   : > { %v1976_v19 = vpop.xlane.xlu1 %1975 }
 0x931   : > { %v1977_v20 = vadd.f32 %v1976_v19, %v1965_v18 }
 0x933   : > { %1979 = vst.msk [vmem:[#allocation4] sm:$0xf] %vm1978_vm15, %v1977_v20 }
 0x934   : > { %v2513_v23 = vmov 0   ;;  %v1985_v21 = vld [vmem:[#allocation3] sm:$0xf]  ;;  %v2514_v27 = vmov 839922192   ;;  %v1998_v31 = vlaneseq  ;;  %v1990_v35 = vld [vmem:[#allocation6] sm:$0xff] }
 0x935   : > { %2420 = vset.pattern.permute.xlu0 %v2513_v23  ;;  %v1996_v30 = vunpack.c.l.s4 %v2514_v27 }
 0x936   : > { %v1999_v33 = vshrl.u32 %v1998_v31, 7 }
 0x937   : > { %v1997_v32 = vunpack.c.0.s8 %v1996_v30 }
 0x939   : > { %v2000_v34 = vsub.s32 %v1997_v32, %v1999_v33 }
 0x93a   : > { %v1986_v22 = vld [vmem:[#allocation4] sm:$0xf] }
 0x93b   : > { %2421 = vlog2.f32 %v1986_v22 }
 0x948   : > { %v2422_v24 = vpop.eup %2421 }
 0x949   : > { %v1988_v25 = vmul.f32 0.6931472, %v2422_v24 }
 0x94b   : > { %v1989_v26 = vadd.f32 %v1988_v25, %v1985_v21 }
 0x94d   : > { %1993 = vperm.xlu0 %2420, %v1989_v26  }
 0x9c8   : > { %v1994_v36 = vpop.permute.xlu0 %1993 }
 0x9c9   : > { %v2001_v37 = vrot.slane %v1994_v36, %v2000_v34 }
 0x9cb   : > { %v2003_v38 = vsub.f32 %v1990_v35, %v2001_v37 }
 0x9cd   : > { %2004 = vst [vmem:[#allocation6] sm:$0xff] %v2003_v38 }
 0x9ce PF: > { %p2341_p11 = scmp.eq.s32.totalorder %s2623_s27, 1  ;;  %s2515_s18 = smov [#allocation6]  }
 0x9cf   : > { %s2012_s20 = sshll.u32 %s2515_s18, 4  ;;  %s2516_s21 = smov [#allocation8]   ;;  %s2013_s20 = int_to_ptr.vmem [resolvable:$true] %s2012_s20 }
 0x9d0   : > { %s2029_s0 = sshll.u32 %s2516_s21, 4  ;;  %s2423_s19 = scalar_lea.vmem %s2013_s20, 128  ;;  %s2030_s0 = int_to_ptr.vmem [resolvable:$true] %s2029_s0 }
 0x9d1   : > { %p2424_p12 = scmp.ne.s32.totalorder %s2013_s20, %s2423_s19  ;;  %p2430_p1 = scmp.lt.s32.totalorder %s2013_s20, %s2013_s20 }
 0x9d2   : > { %p2431_p2 = scmp.lt.s32.totalorder %s2423_s19, %s2423_s19 }
 0x9d3   : > { %p2425_p13 = pnand %p2424_p12, %p2341_p11 }
 0x9d4   : > { %p2432_p3 = por %p2431_p2, %p2430_p1 }
 0x9d5   : > { %p2426_p0 = pneg %p2425_p13 }
 0x9d7   : > { %p2433_p4 = pnand %p2432_p3, %p2426_p0 }
 0x9d9   : > { %2436 = shalt.err (!%p2433_p4)
}
 0x9da   : > { %2334 = dma.vmem_to_hbm [thread:$0]  (%p2341_p11), %s2013_s20, 128, %s2940_s14, [#allocation7]  }
 0x9db   : > { %s2447_s22 = scalar_lea.vmem %s2030_s0, 64  ;;  %p2454_p8 = scmp.lt.s32.totalorder %s2030_s0, %s2030_s0 }
 0x9dc   : > { %p2448_p5 = scmp.ne.s32.totalorder %s2030_s0, %s2447_s22  ;;  %p2455_p9 = scmp.lt.s32.totalorder %s2447_s22, %s2447_s22 }
 0x9de   : > { %p2449_p6 = pnand %p2448_p5, %p2341_p11  ;;  %p2456_p10 = por %p2455_p9, %p2454_p8 }
 0x9e0   : > { %p2450_p7 = pneg %p2449_p6 }
 0x9e2   : > { %p2457_p12 = pnand %p2456_p10, %p2450_p7 }
 0x9e4   : > { %2460 = shalt.err (!%p2457_p12)
}
 0x9e5   : > { %2336 = dma.vmem_to_hbm [thread:$0]  (%p2341_p11), %s2030_s0, 64, %s2943_s17, [#allocation9]  }
 0x9e6   : > { %2484 = dma.done.wait (%p2341_p11), [#allocation7], 128  }
 0x9e7   : > { %2486 = vsyncadd (%p2341_p11), [#allocation7], 4294967168 }
 0x9e8   : > { %2488 = dma.done.wait (%p2341_p11), [#allocation9], 64  }
 0x9e9   : > { %2490 = vsyncadd (%p2341_p11), [#allocation9], 4294967232 }
 0x9ea PF: > { %p27_p13 = scmp.ge.s32.totalorder %s2626_s28, 4   ;;  %s2950_s24 = smov %s2497_s25 }
 0x9eb   : > { %s2951_s25 = smov %s2635_s30  ;;  %s2952_s26 = smov %s2626_s28 }
 0x9ec   :  { %29 = sbr.rel (!%p27_p13) target bundleno = 7 (0x7), region = 185 }
 0x9f1   :  { %2052 = vsyncpa [#allocation7], 1 }
 0x9f2   :  { %2054 = vsyncpa [#allocation7 + $0x1], 1 }
 0x9f3   :  { %2055 = vsyncpa [#allocation9], 1 }

</bundles_post_ra>
